<compile_context>
chip_gen: v7x
topology: tpu7x:2x2x1
jax: 0.10.0
libtpu: 0.0.40
codegen_flags: <defaults>
</compile_context>

<pallas_src>
import jax
import jax.numpy as jnp
from jax.experimental import pallas as pl
from jax.experimental.pallas import tpu as pltpu

NEG_SLOPE = 0.1
HIDDEN = 128
MAX_TILE_B = 512  # bf16 x tile @512 rows = 128 KiB -> trivially fits v7x's 64 MiB VMEM


def _round_up(n, m):
    return ((n + m - 1) // m) * m


def _leaky_relu_f32(x):
    # Matches torch.nn.LeakyReLU(0.1) (x == 0 -> 0).
    return jnp.where(x > 0, x, NEG_SLOPE * x)


def value_net_kernel(x_ref, w_ref, b_ref, w4_ref, b4_ref, o_ref):
    # x_ref : (TILE_B, 128) bf16   -- pipelined over the batch grid
    # w_ref : (3, 128, 128) bf16   -- fc1..fc3 weights, resident in VMEM
    # b_ref : (3, 1, 128)  f32     -- fc1..fc3 biases
    # w4_ref: (1, 128)     f32     -- fc4 weight row
    # b4_ref: (1, 1)       f32     -- fc4 bias
    # o_ref : (TILE_B, 1)  f32
    h = x_ref[...]                                    # bf16 MXU operand
    z = None
    for layer in range(3):                            # static unroll: 3 MXU passes
        z = jnp.dot(h, w_ref[layer], preferred_element_type=jnp.float32)
        z = z + b_ref[layer]
        z = _leaky_relu_f32(z)                        # f32 on the VPU
        h = z.astype(jnp.bfloat16)                    # bf16 operand for next pass
    # fc4 (output width 1): VPU multiply + lane reduction, frees the MXU pass.
    out = jnp.sum(z * w4_ref[...], axis=-1, keepdims=True) + b4_ref[...]
    o_ref[...] = out.astype(o_ref.dtype)


def init_value_net_params(key, in_dims=128):
    """Deterministic init mimicking nn.Linear default (uniform +/- 1/sqrt(fan_in)).
    Weights stored as [in, out] (transposed w.r.t. PyTorch's [out, in])."""
    dims = [(in_dims, HIDDEN), (HIDDEN, HIDDEN), (HIDDEN, HIDDEN), (HIDDEN, 1)]
    params = []
    for i, (fan_in, fan_out) in enumerate(dims):
        kw, kb = jax.random.split(jax.random.fold_in(key, i))
        bound = 1.0 / jnp.sqrt(float(fan_in))
        w = jax.random.uniform(kw, (fan_in, fan_out), jnp.float32, -bound, bound)
        b = jax.random.uniform(kb, (1, fan_out), jnp.float32, -bound, bound)
        params.append((w, b))
    return params


def value_net_forward(x, params):
    """x: [B, 128] float32 -> [B] float32 (matches torch forward + squeeze(1))."""
    B, in_dims = x.shape
    assert in_dims == HIDDEN, "stacked-weight path assumes in_dims == 128"
    (w1, b1), (w2, b2), (w3, b3), (w4, b4) = params

    # Pack parameters once at the call boundary.
    w_stack = jnp.stack([w1, w2, w3]).astype(jnp.bfloat16)   # [3,128,128] bf16
    b_stack = jnp.stack([b1, b2, b3]).astype(jnp.float32)    # [3,1,128]   f32
    w4_row = w4.reshape(1, HIDDEN).astype(jnp.float32)       # [1,128]     f32
    b4_f32 = b4.reshape(1, 1).astype(jnp.float32)            # [1,1]       f32

    # Batch tiling: multiple of 8 sublanes, capped at MAX_TILE_B; pad B to a multiple.
    tile_b = min(MAX_TILE_B, _round_up(B, 8))
    b_pad = _round_up(B, tile_b)
    if b_pad != B:
        x = jnp.pad(x, ((0, b_pad - B), (0, 0)))
    x_bf16 = x.astype(jnp.bfloat16)                          # halves the x DMA bytes
    grid = (b_pad // tile_b,)

    flops = 2 * b_pad * (3 * HIDDEN * HIDDEN + HIDDEN)
    bytes_accessed = (x_bf16.size * 2 + w_stack.size * 2 + b_stack.size * 4
                      + w4_row.size * 4 + b4_f32.size * 4 + b_pad * 4)
    cost = pl.CostEstimate(flops=flops, transcendentals=0,
                           bytes_accessed=bytes_accessed)

    out = pl.pallas_call(
        value_net_kernel,
        out_shape=jax.ShapeDtypeStruct((b_pad, 1), jnp.float32),
        grid=grid,
        in_specs=[
            pl.BlockSpec((tile_b, HIDDEN), lambda i: (i, 0)),        # x: pipelined
            pl.BlockSpec((3, HIDDEN, HIDDEN), lambda i: (0, 0, 0)),  # weights resident
            pl.BlockSpec((3, 1, HIDDEN), lambda i: (0, 0, 0)),       # biases resident
            pl.BlockSpec((1, HIDDEN), lambda i: (0, 0)),             # fc4 weight row
            pl.BlockSpec((1, 1), lambda i: (0, 0)),                  # fc4 bias
        ],
        out_specs=pl.BlockSpec((tile_b, 1), lambda i: (i, 0)),
        compiler_params=pltpu.CompilerParams(
            dimension_semantics=("parallel",),                       # 2 TCs on v7x
        ),
        cost_estimate=cost,
    )(x_bf16, w_stack, b_stack, w4_row, b4_f32)

    return out[:B, 0]  # matches torch .squeeze(1)


def value_net_reference(x, params):
    h = x
    for i, (w, b) in enumerate(params):
        h = h @ w + b
        if i < 3:
            h = jnp.where(h > 0, h, NEG_SLOPE * h)
    return h[:, 0]


if __name__ == "__main__":
    key = jax.random.PRNGKey(0)
    k_param, k_x1, k_x2 = jax.random.split(key, 3)

    params = init_value_net_params(k_param, in_dims=HIDDEN)

    # Small test (single grid step), consistent with the module's usage.
    x_small = jax.random.normal(k_x1, (8, HIDDEN), jnp.float32)
    y_small = jax.block_until_ready(value_net_forward(x_small, params))
    y_small_ref = value_net_reference(x_small, params)
    assert y_small.shape == (8,)
    # bf16 MXU operands with f32 accumulation -> relaxed tolerance vs f32 reference.
    assert jnp.allclose(y_small, y_small_ref, atol=3e-2, rtol=3e-2)

    # Non-multiple batch exercising padding + multi-step batch grid.
    x_big = jax.random.normal(k_x2, (700, HIDDEN), jnp.float32)
    y_big = jax.block_until_ready(value_net_forward(x_big, params))
    y_big_ref = value_net_reference(x_big, params)
    assert y_big.shape == (700,)
    assert jnp.allclose(y_big, y_big_ref, atol=3e-2, rtol=3e-2)

    print("KERNEL_OK")
</pallas_src>

<mosaic_0001>
module attributes {stable_mosaic.version = 11 : i64} {
  func.func @value_net_kernel(%arg0: i32, %arg1: memref<8x128xbf16, #tpu.memory_space<vmem>>, %arg2: memref<3x128x128xbf16, #tpu.memory_space<vmem>>, %arg3: memref<3x1x128xf32, #tpu.memory_space<vmem>>, %arg4: memref<1x128xf32, #tpu.memory_space<vmem>>, %arg5: memref<1x1xf32, #tpu.memory_space<vmem>>, %arg6: memref<8x1xf32, #tpu.memory_space<vmem>>) attributes {dimension_semantics = [#tpu.dimension_semantics<parallel>], iteration_bounds = array<i64: 1>, scalar_prefetch = 0 : i64, scratch_operands = 0 : i64, tpu.core_type = #tpu.core_type<tc>, window_params = [{transform_indices = @transform_0, window_bounds = array<i64: 8, 128>}, {pipeline_mode = #tpu.pipeline_mode<synchronous>, transform_indices = @transform_1, window_bounds = array<i64: 3, 128, 128>}, {pipeline_mode = #tpu.pipeline_mode<synchronous>, transform_indices = @transform_2, window_bounds = array<i64: 3, 1, 128>}, {pipeline_mode = #tpu.pipeline_mode<synchronous>, transform_indices = @transform_3, window_bounds = array<i64: 1, 128>}, {pipeline_mode = #tpu.pipeline_mode<synchronous>, transform_indices = @transform_4, window_bounds = array<i64: 1, 1>}, {transform_indices = @transform_5, window_bounds = array<i64: 8, 1>}]} {
    %c0 = arith.constant 0 : index
    %c0_0 = arith.constant 0 : index
    %0 = vector.load %arg1[%c0, %c0_0] : memref<8x128xbf16, #tpu.memory_space<vmem>>, vector<8x128xbf16>
    %c0_1 = arith.constant 0 : index
    %c0_2 = arith.constant 0 : index
    %c0_3 = arith.constant 0 : index
    %1 = vector.load %arg2[%c0_1, %c0_2, %c0_3] : memref<3x128x128xbf16, #tpu.memory_space<vmem>>, vector<1x128x128xbf16>
    %2 = vector.shape_cast %1 : vector<1x128x128xbf16> to vector<128x128xbf16>
    %cst = arith.constant dense<0.000000e+00> : vector<8x128xf32>
    %3 = tpu.matmul %0, %2, %cst {dimension_numbers = #tpu.dot_dimension_numbers<[1], [0], [0], [1], [0, 0, 1, 1], [], []>} : vector<8x128xbf16>, vector<128x128xbf16>, vector<8x128xf32> -> vector<8x128xf32>
    %c0_4 = arith.constant 0 : index
    %c0_5 = arith.constant 0 : index
    %c0_6 = arith.constant 0 : index
    %4 = vector.load %arg3[%c0_4, %c0_5, %c0_6] : memref<3x1x128xf32, #tpu.memory_space<vmem>>, vector<1x1x128xf32>
    %5 = vector.shape_cast %4 : vector<1x1x128xf32> to vector<1x128xf32>
    %6 = vector.broadcast %5 : vector<1x128xf32> to vector<8x128xf32>
    %7 = arith.addf %3, %6 : vector<8x128xf32>
    %cst_7 = arith.constant 0.000000e+00 : f32
    %8 = vector.broadcast %cst_7 : f32 to vector<8x128xf32>
    %9 = arith.cmpf ogt, %7, %8 : vector<8x128xf32>
    %cst_8 = arith.constant 1.000000e-01 : f32
    %10 = vector.broadcast %cst_8 : f32 to vector<8x128xf32>
    %11 = arith.mulf %10, %7 : vector<8x128xf32>
    %12 = arith.select %9, %7, %11 : vector<8x128xi1>, vector<8x128xf32>
    %13 = arith.truncf %12 : vector<8x128xf32> to vector<8x128xbf16>
    %c1 = arith.constant 1 : index
    %c0_9 = arith.constant 0 : index
    %c0_10 = arith.constant 0 : index
    %14 = vector.load %arg2[%c1, %c0_9, %c0_10] : memref<3x128x128xbf16, #tpu.memory_space<vmem>>, vector<1x128x128xbf16>
    %15 = vector.shape_cast %14 : vector<1x128x128xbf16> to vector<128x128xbf16>
    %cst_11 = arith.constant dense<0.000000e+00> : vector<8x128xf32>
    %16 = tpu.matmul %13, %15, %cst_11 {dimension_numbers = #tpu.dot_dimension_numbers<[1], [0], [0], [1], [0, 0, 1, 1], [], []>} : vector<8x128xbf16>, vector<128x128xbf16>, vector<8x128xf32> -> vector<8x128xf32>
    %c1_12 = arith.constant 1 : index
    %c0_13 = arith.constant 0 : index
    %c0_14 = arith.constant 0 : index
    %17 = vector.load %arg3[%c1_12, %c0_13, %c0_14] : memref<3x1x128xf32, #tpu.memory_space<vmem>>, vector<1x1x128xf32>
    %18 = vector.shape_cast %17 : vector<1x1x128xf32> to vector<1x128xf32>
    %19 = vector.broadcast %18 : vector<1x128xf32> to vector<8x128xf32>
    %20 = arith.addf %16, %19 : vector<8x128xf32>
    %cst_15 = arith.constant 0.000000e+00 : f32
    %21 = vector.broadcast %cst_15 : f32 to vector<8x128xf32>
    %22 = arith.cmpf ogt, %20, %21 : vector<8x128xf32>
    %cst_16 = arith.constant 1.000000e-01 : f32
    %23 = vector.broadcast %cst_16 : f32 to vector<8x128xf32>
    %24 = arith.mulf %23, %20 : vector<8x128xf32>
    %25 = arith.select %22, %20, %24 : vector<8x128xi1>, vector<8x128xf32>
    %26 = arith.truncf %25 : vector<8x128xf32> to vector<8x128xbf16>
    %c2 = arith.constant 2 : index
    %c0_17 = arith.constant 0 : index
    %c0_18 = arith.constant 0 : index
    %27 = vector.load %arg2[%c2, %c0_17, %c0_18] : memref<3x128x128xbf16, #tpu.memory_space<vmem>>, vector<1x128x128xbf16>
    %28 = vector.shape_cast %27 : vector<1x128x128xbf16> to vector<128x128xbf16>
    %cst_19 = arith.constant dense<0.000000e+00> : vector<8x128xf32>
    %29 = tpu.matmul %26, %28, %cst_19 {dimension_numbers = #tpu.dot_dimension_numbers<[1], [0], [0], [1], [0, 0, 1, 1], [], []>} : vector<8x128xbf16>, vector<128x128xbf16>, vector<8x128xf32> -> vector<8x128xf32>
    %c2_20 = arith.constant 2 : index
    %c0_21 = arith.constant 0 : index
    %c0_22 = arith.constant 0 : index
    %30 = vector.load %arg3[%c2_20, %c0_21, %c0_22] : memref<3x1x128xf32, #tpu.memory_space<vmem>>, vector<1x1x128xf32>
    %31 = vector.shape_cast %30 : vector<1x1x128xf32> to vector<1x128xf32>
    %32 = vector.broadcast %31 : vector<1x128xf32> to vector<8x128xf32>
    %33 = arith.addf %29, %32 : vector<8x128xf32>
    %cst_23 = arith.constant 0.000000e+00 : f32
    %34 = vector.broadcast %cst_23 : f32 to vector<8x128xf32>
    %35 = arith.cmpf ogt, %33, %34 : vector<8x128xf32>
    %cst_24 = arith.constant 1.000000e-01 : f32
    %36 = vector.broadcast %cst_24 : f32 to vector<8x128xf32>
    %37 = arith.mulf %36, %33 : vector<8x128xf32>
    %38 = arith.select %35, %33, %37 : vector<8x128xi1>, vector<8x128xf32>
    %c0_25 = arith.constant 0 : index
    %c0_26 = arith.constant 0 : index
    %39 = vector.load %arg4[%c0_25, %c0_26] : memref<1x128xf32, #tpu.memory_space<vmem>>, vector<1x128xf32>
    %40 = vector.broadcast %39 : vector<1x128xf32> to vector<8x128xf32>
    %41 = arith.mulf %38, %40 : vector<8x128xf32>
    %cst_27 = arith.constant dense<0.000000e+00> : vector<8xf32>
    %42 = vector.multi_reduction <add>, %41, %cst_27 [1] : vector<8x128xf32> to vector<8xf32>
    %43 = vector.shape_cast %42 : vector<8xf32> to vector<8x1xf32>
    %c0_28 = arith.constant 0 : index
    %c0_29 = arith.constant 0 : index
    %44 = vector.load %arg5[%c0_28, %c0_29] : memref<1x1xf32, #tpu.memory_space<vmem>>, vector<1x1xf32>
    %45 = vector.broadcast %44 : vector<1x1xf32> to vector<8x1xf32>
    %46 = arith.addf %43, %45 : vector<8x1xf32>
    %c0_30 = arith.constant 0 : index
    %c0_31 = arith.constant 0 : index
    %47 = vector.load %arg6[%c0_30, %c0_31] : memref<8x1xf32, #tpu.memory_space<vmem>>, vector<8x1xf32>
    tpu.vector_store %arg6[%c0_30, %c0_31], %46 {strides = array<i32>} : memref<8x1xf32, #tpu.memory_space<vmem>>, vector<8x1xf32>,
    return
  }
  func.func @transform_0(%arg0: i32) -> (i32, i32) {
    %c0_i32 = arith.constant 0 : i32
    %c0_i32_0 = arith.constant 0 : i32
    return %arg0, %c0_i32 : i32, i32
  }
  func.func @transform_1(%arg0: i32) -> (i32, i32, i32) {
    %c0_i32 = arith.constant 0 : i32
    %c0_i32_0 = arith.constant 0 : i32
    %c0_i32_1 = arith.constant 0 : i32
    %c0_i32_2 = arith.constant 0 : i32
    return %c0_i32, %c0_i32_0, %c0_i32_1 : i32, i32, i32
  }
  func.func @transform_2(%arg0: i32) -> (i32, i32, i32) {
    %c0_i32 = arith.constant 0 : i32
    %c0_i32_0 = arith.constant 0 : i32
    %c0_i32_1 = arith.constant 0 : i32
    %c0_i32_2 = arith.constant 0 : i32
    return %c0_i32, %c0_i32_0, %c0_i32_1 : i32, i32, i32
  }
  func.func @transform_3(%arg0: i32) -> (i32, i32) {
    %c0_i32 = arith.constant 0 : i32
    %c0_i32_0 = arith.constant 0 : i32
    %c0_i32_1 = arith.constant 0 : i32
    return %c0_i32, %c0_i32_0 : i32, i32
  }
  func.func @transform_4(%arg0: i32) -> (i32, i32) {
    %c0_i32 = arith.constant 0 : i32
    %c0_i32_0 = arith.constant 0 : i32
    %c0_i32_1 = arith.constant 0 : i32
    return %c0_i32, %c0_i32_0 : i32, i32
  }
  func.func @transform_5(%arg0: i32) -> (i32, i32) {
    %c0_i32 = arith.constant 0 : i32
    %c0_i32_0 = arith.constant 0 : i32
    return %arg0, %c0_i32 : i32, i32
  }
}

</mosaic_0001>

<bundles_post_ra>
// kernel: tpu_custom_call.1
= control target key start
LH: loop header
LB: loop body
LE: loop exit
PB: predicated region body
PF: predicated region fallthrough
CT: control target
= control target key end

     0   :  { %s735_s0 = inlined_call_operand.hbm [shape: bf16[8,128], index: 0, kind: input, shape index: {}]   ;;  %s736_s1 = inlined_call_operand.hbm [shape: bf16[3,128,128], index: 1, kind: input, shape index: {}]   ;;  %s737_s2 = inlined_call_operand.vmem [shape: f32[3,1,128], index: 2, kind: input, shape index: {}]   ;;  %s738_s3 = inlined_call_operand.vmem [shape: f32[1,128], index: 3, kind: input, shape index: {}]   ;;  %s739_s4 = inlined_call_operand.<no memory space> [shape: f32[1,1], index: 4, kind: input, shape index: {}]   ;;  %s740_s5 = inlined_call_operand.vmem [shape: f32[8,1], index: 5, kind: output, shape index: {}]  }
   0x1   :  { %v10_v0 = vstv %s739_s4 }
   0x2   :  { %11 = vst [vmem:[#allocation2] sm:$0x1] %v10_v0 }
   0x3   :  { %12 = vsyncpa [#allocation4], 0 }
   0x4   :  { %13 = vsyncpa [#allocation6], 0  ;;  %s620_s20 = smov [#allocation3]   ;;  %s621_s22 = smov [#allocation5]  }
   0x5   :  { %s20_s21 = sshll.u32 %s620_s20, 4  ;;  %s29_s23 = sshll.u32 %s621_s22, 4  ;;  %s21_s21 = int_to_ptr.vmem [resolvable:$true] %s20_s21  ;;  %s659_s23 = int_to_ptr.vmem [resolvable:$true] %s29_s23 }
   0x6   :  { %s572_s26 = scalar_lea.hbm %s735_s0, 64 }
   0x7   :  { %p573_p0 = scmp.ne.s32.totalorder %s735_s0, %s572_s26  ;;  %p576_p1 = scmp.lt.u32.totalorder %s572_s26, %s735_s0 }
   0x9   :  { %p578_p2 = pnand %p576_p1, %p573_p0 }
   0xb   :  { %581 = shalt.err (!%p578_p2)
}
   0xc   :  { %s582_s30 = scalar_lea.vmem %s21_s21, 64  ;;  %p587_p4 = scmp.lt.s32.totalorder %s21_s21, %s21_s21 }
   0xd   :  { %p583_p3 = scmp.ne.s32.totalorder %s21_s21, %s582_s30  ;;  %p588_p5 = scmp.lt.s32.totalorder %s582_s30, %s582_s30 }
   0xf   :  { %p589_p6 = por %p588_p5, %p587_p4 }
  0x11   :  { %p590_p7 = pnand %p589_p6, %p583_p3 }
  0x13   :  { %593 = shalt.err (!%p590_p7)
}
  0x14   :  { %23 = dma.hbm_to_vmem [thread:$0]  %s735_s0, 64, %s21_s21, [#allocation4]  }
  0x15   :  { %s594_s10 = scalar_lea.hbm %s736_s1, 3072 }
  0x16   :  { %p595_p8 = scmp.ne.s32.totalorder %s736_s1, %s594_s10  ;;  %p598_p9 = scmp.lt.u32.totalorder %s594_s10, %s736_s1 }
  0x18   :  { %p600_p10 = pnand %p598_p9, %p595_p8 }
  0x1a   :  { %603 = shalt.err (!%p600_p10)
}
  0x1b   :  { %s604_s15 = scalar_lea.vmem %s659_s23, 3072  ;;  %p609_p12 = scmp.lt.s32.totalorder %s659_s23, %s659_s23 }
  0x1c   :  { %p605_p11 = scmp.ne.s32.totalorder %s659_s23, %s604_s15  ;;  %p610_p13 = scmp.lt.s32.totalorder %s604_s15, %s604_s15 }
  0x1e   :  { %p611_p0 = por %p610_p13, %p609_p12 }
  0x20   :  { %p612_p1 = pnand %p611_p0, %p605_p11 }
  0x22   :  { %615 = shalt.err (!%p612_p1)
}
  0x23   :  { %s622_s0 = smov 64   ;;  %s623_s16 = smov 4  }
  0x24   :  { %35 = dma.hbm_to_vmem [thread:$0]  %s736_s1, 3072, %s659_s23, [#allocation6], %s622_s0, %s622_s0, %s623_s16  }
  0x25   :  { %616 = dma.done.wait [#allocation4], 64  }
  0x26   :  { %617 = vsyncadd [#allocation4], 4294967232 }
  0x27   :  { %618 = dma.done.wait [#allocation6], 3072  }
  0x28   :  { %619 = vsyncadd [#allocation6], 4294964224  ;;  %v624_v1 = vmov 0.0   ;;  %vm625_vm0 = vmmov 0   ;;  %v548_v2 = vld [vmem:[#allocation5] sm:$0xff]   ;;  %v549_v3 = vld [vmem:[#allocation5 + $0x8] sm:$0xff]  }
  0x29   :  { %482 = vmatprep.subr.bf16.mxu0 %v624_v1  ;;  %498 = vmatprep.mubr.msk.bf16.mxu0 %vm625_vm0, %v624_v1  ;;  %v550_v4 = vld [vmem:[#allocation5 + $0x10] sm:$0xff]   ;;  %v556_v5 = vld [vmem:[#allocation5 + $0x40] sm:$0xff]   ;;  %v551_v6 = vld [vmem:[#allocation5 + $0x18] sm:$0xff]   ;;  %vm416_vm4 = vcmask 7168  }
  0x2a   :  { %502 = vmatprep.subr.bf16.mxu1 %v624_v1  ;;  %518 = vmatprep.mubr.msk.bf16.mxu1 %vm625_vm0, %v624_v1  ;;  %v557_v7 = vld [vmem:[#allocation5 + $0x48] sm:$0xff]   ;;  %v552_v8 = vld [vmem:[#allocation5 + $0x20] sm:$0xff]   ;;  %v558_v9 = vld [vmem:[#allocation5 + $0x50] sm:$0xff]  }
  0x2b   :  { %483 = vmatpush3.bf16.msra.mxu0 %v548_v2  ;;  %503 = vmatpush3.bf16.msra.mxu1 %v556_v5  ;;  %v553_v10 = vld [vmem:[#allocation5 + $0x28] sm:$0xff]   ;;  %v559_v11 = vld [vmem:[#allocation5 + $0x58] sm:$0xff]   ;;  %v554_v12 = vld [vmem:[#allocation5 + $0x30] sm:$0xff]  }
  0x2c   :  { %484 = vmatprep.subr.bf16.mxu0 %v624_v1  ;;  %504 = vmatprep.subr.bf16.mxu1 %v624_v1  ;;  %v560_v13 = vld [vmem:[#allocation5 + $0x60] sm:$0xff]   ;;  %v555_v14 = vld [vmem:[#allocation5 + $0x38] sm:$0xff]   ;;  %v561_v15 = vld [vmem:[#allocation5 + $0x68] sm:$0xff]  }
  0x2d   :  { %v49_v16 = vld [vmem:[#allocation3] sm:$0xf]  ;;  %v562_v17 = vld [vmem:[#allocation5 + $0x70] sm:$0xff]   ;;  %v564_v19 = vld [vmem:[#allocation5 + $0x80] sm:$0xff]  }
  0x2e   :  { %v563_v18 = vld [vmem:[#allocation5 + $0x78] sm:$0xff]   ;;  %v565_v20 = vld [vmem:[#allocation5 + $0x88] sm:$0xff]   ;;  %v566_v21 = vld [vmem:[#allocation5 + $0x90] sm:$0xff]  }
  0x2f   :  { %485 = vmatpush3.bf16.msra.mxu0 %v549_v3  ;;  %505 = vmatpush3.bf16.msra.mxu1 %v557_v7  ;;  %v567_v22 = vld [vmem:[#allocation5 + $0x98] sm:$0xff]   ;;  %v568_v23 = vld [vmem:[#allocation5 + $0xa0] sm:$0xff]   ;;  %v569_v24 = vld [vmem:[#allocation5 + $0xa8] sm:$0xff]  }
  0x30   :  { %486 = vmatprep.subr.bf16.mxu0 %v624_v1  ;;  %506 = vmatprep.subr.bf16.mxu1 %v624_v1  ;;  %v424_v25 = vld [vmem:[%s737_s2] ss:$0 sm:$0xff]  ;;  %v570_v34 = vld [vmem:[#allocation5 + $0xb0] sm:$0xff]   ;;  %v434_v36 = vld [vmem:[%s737_s2 + $0x1] ss:$0 sm:$0xff] }
  0x31   :  { %v571_v35 = vld [vmem:[#allocation5 + $0xb8] sm:$0xff]  }
  0x32   :  { %v444_v45 = vld [vmem:[%s737_s2 + $0x2] ss:$0 sm:$0xff]  ;;  %v453_v52 = vld [vmem:[%s738_s3] ss:$0 sm:$0xff] }
  0x33   :  { %487 = vmatpush3.bf16.msra.mxu0 %v550_v4  ;;  %507 = vmatpush3.bf16.msra.mxu1 %v558_v9  ;;  %v454_v55 = vld [vmem:[#allocation2] ss:$0 sm:$0xff] }
  0x34   :  { %488 = vmatprep.subr.bf16.mxu0 %v624_v1  ;;  %508 = vmatprep.subr.bf16.mxu1 %v624_v1 }
  0x37   :  { %489 = vmatpush3.bf16.msra.mxu0 %v551_v6  ;;  %509 = vmatpush3.bf16.msra.mxu1 %v559_v11 }
  0x38   :  { %490 = vmatprep.subr.bf16.mxu0 %v624_v1  ;;  %510 = vmatprep.subr.bf16.mxu1 %v624_v1 }
  0x3b   :  { %491 = vmatpush3.bf16.msra.mxu0 %v552_v8  ;;  %511 = vmatpush3.bf16.msra.mxu1 %v560_v13 }
  0x3c   :  { %492 = vmatprep.subr.bf16.mxu0 %v624_v1  ;;  %512 = vmatprep.subr.bf16.mxu1 %v624_v1 }
  0x3f   :  { %493 = vmatpush3.bf16.msra.mxu0 %v553_v10  ;;  %513 = vmatpush3.bf16.msra.mxu1 %v561_v15 }
  0x40   :  { %494 = vmatprep.subr.bf16.mxu0 %v624_v1  ;;  %514 = vmatprep.subr.bf16.mxu1 %v624_v1 }
  0x43   :  { %495 = vmatpush3.bf16.msra.mxu0 %v554_v12  ;;  %515 = vmatpush3.bf16.msra.mxu1 %v562_v17 }
  0x44   :  { %496 = vmatprep.subr.bf16.mxu0 %v624_v1  ;;  %516 = vmatprep.subr.bf16.mxu1 %v624_v1 }
  0x47   :  { %497 = vmatpush3.bf16.msra.mxu0 %v555_v14  ;;  %517 = vmatpush3.bf16.msra.mxu1 %v563_v18 }
  0x48   :  { %522 = vmatprep.subr.bf16.mxu0 %v624_v1 }
  0x4a   :  { %499 = vmatmul.mubr.bf16.vlgmr.msra.gmra.mrb[0].mxu0 %v49_v16 }
  0x4b   :  { %538 = vmatprep.mubr.msk.bf16.mxu0 %vm625_vm0, %v624_v1  ;;  %523 = vmatpush3.bf16.msra.mxu0 %v564_v19 }
  0x4c   :  { %524 = vmatprep.subr.bf16.mxu0 %v624_v1 }
  0x4f   :  { %525 = vmatpush3.bf16.msra.mxu0 %v565_v20 }
  0x50   :  { %526 = vmatprep.subr.bf16.mxu0 %v624_v1 }
  0x53   :  { %527 = vmatpush3.bf16.msra.mxu0 %v566_v21 }
  0x54   :  { %528 = vmatprep.subr.bf16.mxu0 %v624_v1 }
  0x57   :  { %529 = vmatpush3.bf16.msra.mxu0 %v567_v22 }
  0x58   :  { %530 = vmatprep.subr.bf16.mxu0 %v624_v1 }
  0x5b   :  { %531 = vmatpush3.bf16.msra.mxu0 %v568_v23 }
  0x5c   :  { %532 = vmatprep.subr.bf16.mxu0 %v624_v1 }
  0x5f   :  { %533 = vmatpush3.bf16.msra.mxu0 %v569_v24 }
  0x60   :  { %534 = vmatprep.subr.bf16.mxu0 %v624_v1 }
  0x63   :  { %535 = vmatpush3.bf16.msra.mxu0 %v570_v34 }
  0x64   :  { %536 = vmatprep.subr.bf16.mxu0 %v624_v1 }
  0x67   :  { %537 = vmatpush3.bf16.msra.mxu0 %v571_v35 }
 0x11d   :  { %v155_v26 = vpop.f32.mrb[0].mxu0 }
 0x11e   :  { %v156_v27 = vadd.f32 %v424_v25, %v155_v26  ;;  %v500_v28 = vpop.f32.mrb[1].mxu0 }
 0x11f   :  { %v158_v29 = vpop.f32.mrb[2].mxu0 }
 0x120   :  { %vm161_vm1 = vcmp.gt.f32.partialorder %v156_v27, 0.0  ;;  %v162_v30 = vmul.f32 0.1, %v156_v27  ;;  %v501_v31 = vpop.f32.mrb[3].mxu0 }
 0x122   :  { %v163_v32 = vsel %vm161_vm1, %v156_v27, %v162_v30 }
 0x123   :  { %v164_v33 = vpack.c.bf16 %v163_v32, %v163_v32 }
 0x125   :  { %519 = vmatmul.mubr.bf16.vlgmr.msra.gmra.mrb[0].mxu1 %v164_v33 }
 0x1f8   :  { %v272_v37 = vpop.f32.mrb[0].mxu1 }
 0x1f9   :  { %v273_v38 = vadd.f32 %v434_v36, %v272_v37  ;;  %v520_v39 = vpop.f32.mrb[1].mxu1 }
 0x1fa   :  { %v275_v40 = vpop.f32.mrb[2].mxu1 }
 0x1fb   :  { %vm278_vm2 = vcmp.gt.f32.partialorder %v273_v38, 0.0  ;;  %v279_v41 = vmul.f32 0.1, %v273_v38  ;;  %v521_v42 = vpop.f32.mrb[3].mxu1 }
 0x1fd   :  { %v280_v43 = vsel %vm278_vm2, %v273_v38, %v279_v41 }
 0x1fe   :  { %v281_v44 = vpack.c.bf16 %v280_v43, %v280_v43 }
 0x200   :  { %539 = vmatmul.mubr.bf16.vlgmr.msra.gmra.mrb[4].mxu0 %v281_v44 }
 0x2d3   :  { %v389_v46 = vpop.f32.mrb[4].mxu0 }
 0x2d4   :  { %v390_v47 = vadd.f32 %v444_v45, %v389_v46  ;;  %v540_v48 = vpop.f32.mrb[5].mxu0 }
 0x2d5   :  { %v392_v49 = vpop.f32.mrb[6].mxu0 }
 0x2d6   :  { %v396_v50 = vmul.f32 0.1, %v390_v47  ;;  %v541_v51 = vpop.f32.mrb[7].mxu0  ;;  %vm395_vm3 = vcmp.gt.f32.partialorder %v390_v47, 0.0 }
 0x2d8   :  { %v397_v53 = vsel %vm395_vm3, %v390_v47, %v396_v50 }
 0x2d9   :  { %v405_v54 = vmul.f32 %v453_v52, %v397_v53 }
 0x2db   :  { %406 = vadd.xlane.f32.xlu0 %v405_v54 }
 0x368   :  { %v407_v56 = vpop.xlane.xlu0 %406 }
 0x369   :  { %v415_v57 = vadd.f32 %v454_v55, %v407_v56 }
 0x36b   :  { %417 = vst.msk [vmem:[%s740_s5] sm:$0xff] %vm416_vm4, %v415_v57 }
 0x36c   :  { %422 = vsyncpa [#allocation4], 1 }
 0x36d   :  { %423 = vsyncpa [#allocation6], 1 }

</bundles_post_ra>
